<compile_context>
chip_gen: v7x
topology: tpu7x:2x2x1
jax: 0.10.0
libtpu: 0.0.40
codegen_flags: <defaults>
</compile_context>

<pallas_src>
import functools

import jax
import jax.numpy as jnp
from jax.experimental import pallas as pl
from jax.experimental.pallas import tpu as pltpu


def _cat_conv3x3_kernel(x_ref, halo_ref, w_ref, b_ref, out_ref, im2col_ref,
                        *, th, W, Cin, Cout):
    # x_ref     : (1, Cin, th*W)      main tile, flattened spatial on lanes
    # halo_ref  : (1, 1, 2*Cin, W)    rows just above/below this tile (zeros at
    #                                 the image's top/bottom edge)
    # w_ref     : (Cout, 9*Cin)       weights, K ordered as (tap = kh*3+kw, cin)
    # b_ref     : (Cout, 1)           bias
    # out_ref   : (1, Cout+Cin, th*W) rows [0:Cout) = relu(conv+b), [Cout:) = x
    # im2col_ref: (9*Cin, th*W)       VMEM scratch for the single big-K dot
    TW = th * W
    x = x_ref[0]                       # (Cin, TW)
    halo = halo_ref[0, 0]              # (2*Cin, W)
    top = halo[:Cin]                   # row above the tile (or zeros)
    bot = halo[Cin:]                   # row below the tile (or zeros)

    # Tile-local column index, for zero padding at the image's left/right edge.
    col = jax.lax.broadcasted_iota(jnp.int32, (1, TW), 1) % W
    col1 = jax.lax.broadcasted_iota(jnp.int32, (1, W), 1)

    for dy in (-1, 0, 1):
        for dx in (-1, 0, 1):
            t = (dy + 1) * 3 + (dx + 1)
            shift = dy * W + dx
            # Bulk: xs[p] == x[p + shift] (pure lane rotation on the XLU).
            # Rows that would wrap across the tile's top/bottom edge are fully
            # overwritten by the halo fix-up below, so only the left/right
            # column masks are applied here.
            xs = pltpu.roll(x, (-shift) % TW, axis=1) if shift != 0 else x
            if dx == -1:
                xs = jnp.where(col >= 1, xs, jnp.zeros_like(xs))
            elif dx == 1:
                xs = jnp.where(col <= W - 2, xs, jnp.zeros_like(xs))
            im2col_ref[t * Cin:(t + 1) * Cin, :] = xs

            # Halo fix-up: output row 0 (dy=-1) / row th-1 (dy=+1) of this tile
            # reads the neighbouring image row, not a rolled-around lane.
            if dy != 0:
                h = top if dy == -1 else bot
                if dx == -1:
                    hs = jnp.where(col1 >= 1, pltpu.roll(h, 1, axis=1),
                                   jnp.zeros_like(h))
                elif dx == 1:
                    hs = jnp.where(col1 <= W - 2, pltpu.roll(h, W - 1, axis=1),
                                   jnp.zeros_like(h))
                else:
                    hs = h
                if dy == -1:
                    im2col_ref[t * Cin:(t + 1) * Cin, 0:W] = hs
                else:
                    im2col_ref[t * Cin:(t + 1) * Cin, (th - 1) * W:] = hs

    # One big-K MXU contraction: (Cout, 9*Cin) @ (9*Cin, th*W), f32 accumulate.
    mm = jnp.dot(w_ref[...], im2col_ref[...],
                 preferred_element_type=jnp.float32)
    conv = jnp.maximum(mm + b_ref[...], 0.0)           # bias + ReLU on the VPU

    # Channel concat = two sublane-aligned slice stores (no jnp.concatenate).
    out_ref[0, :Cout, :] = conv.astype(out_ref.dtype)
    out_ref[0, Cout:, :] = x.astype(out_ref.dtype)


def _choose_h_tile(H, W, Cin, Cout, itemsize, vmem_budget_bytes):
    """H-tile size: lane-dense (th*W % 128 == 0 or full image), VMEM-bounded,
    and giving >= 2 grid steps along H when possible (pipelining / 2 TCs)."""
    def vmem_bytes(th):
        lanes = th * W
        x_blk = Cin * lanes * itemsize
        out_blk = (Cout + Cin) * lanes * 4
        halo_blk = 2 * Cin * W * itemsize
        im2col = 9 * Cin * lanes * itemsize
        weights = Cout * 9 * Cin * itemsize + Cout * 4
        return 2 * (x_blk + out_blk + halo_blk) + im2col + weights

    cands = [th for th in range(1, H + 1)
             if H % th == 0 and ((th * W) % 128 == 0 or th == H)]
    fitting = [th for th in cands if vmem_bytes(th) <= vmem_budget_bytes]
    pool = fitting if fitting else [min(cands, key=vmem_bytes)]
    multi = [th for th in pool if H // th >= 2]
    pool = multi if multi else pool
    return max(pool, key=lambda th: th * W)


def cat_sequential_nchw(x_nchw, w_oihw, bias, *, compute_dtype=jnp.float32,
                        out_dtype=None, vmem_budget_bytes=12 << 20):
    """cat([relu(conv3x3(x) + b), x], dim=1), PyTorch NCHW convention.

    x_nchw: (N, Cin, H, W), w_oihw: (Cout, Cin, 3, 3), bias: (Cout,)
    -> (N, Cout + Cin, H, W) in out_dtype (default x.dtype -> exact x
    passthrough, as torch.cat).  vmem_budget_bytes is sized for v7x's 64 MiB
    VMEM; on v5e/v6e it can be raised (with vmem_limit_bytes) for bigger tiles.
    """
    N, Cin, H, W = x_nchw.shape
    Cout = w_oihw.shape[0]
    if out_dtype is None:
        out_dtype = x_nchw.dtype

    th = _choose_h_tile(H, W, Cin, Cout, jnp.dtype(compute_dtype).itemsize,
                        vmem_budget_bytes)
    n_h = H // th
    TW = th * W

    x_c = x_nchw.astype(compute_dtype)
    # (N, Cin, H, W) -> (N, Cin, H*W): contiguous reshape, no transpose.
    x_flat = x_c.reshape(N, Cin, H * W)

    # Seam rows for each H tile (image zero padding already applied):
    #   halos[n, h, :Cin] = x[n, :, h*th - 1]   (zeros for the first tile)
    #   halos[n, h, Cin:] = x[n, :, h*th + th]  (zeros for the last tile)
    zrow = jnp.zeros((N, Cin, 1, W), compute_dtype)
    xp = jnp.concatenate([zrow, x_c, zrow], axis=2)           # (N, Cin, H+2, W)
    top = xp[:, :, 0:H - th + 1:th, :]                        # (N, Cin, n_h, W)
    bot = xp[:, :, th + 1:H + 2:th, :]                        # (N, Cin, n_h, W)
    halos = jnp.concatenate(
        [jnp.transpose(top, (0, 2, 1, 3)), jnp.transpose(bot, (0, 2, 1, 3))],
        axis=2)                                               # (N, n_h, 2Cin, W)

    # OIHW -> (Cout, 9*Cin), K ordered as (tap = kh*3 + kw, cin).
    w2 = jnp.transpose(w_oihw, (0, 2, 3, 1)).reshape(Cout, 9 * Cin)
    w2 = w2.astype(compute_dtype)
    b2 = bias.reshape(Cout, 1).astype(jnp.float32)

    kernel = functools.partial(_cat_conv3x3_kernel, th=th, W=W, Cin=Cin,
                               Cout=Cout)

    out = pl.pallas_call(
        kernel,
        out_shape=jax.ShapeDtypeStruct((N, Cout + Cin, H * W), out_dtype),
        grid_spec=pltpu.PrefetchScalarGridSpec(
            num_scalar_prefetch=0,
            grid=(N, n_h),
            in_specs=[
                pl.BlockSpec((1, Cin, TW), lambda n, h: (n, 0, h)),
                pl.BlockSpec((1, 1, 2 * Cin, W), lambda n, h: (n, h, 0, 0)),
                pl.BlockSpec((Cout, 9 * Cin), lambda n, h: (0, 0)),
                pl.BlockSpec((Cout, 1), lambda n, h: (0, 0)),
            ],
            out_specs=pl.BlockSpec((1, Cout + Cin, TW), lambda n, h: (n, 0, h)),
            scratch_shapes=[pltpu.VMEM((9 * Cin, TW), compute_dtype)],
        ),
        compiler_params=pltpu.CompilerParams(
            dimension_semantics=("parallel", "parallel")),
    )(x_flat, halos, w2, b2)

    return out.reshape(N, Cout + Cin, H, W)


def _reference_nchw(x_nchw, w_oihw, bias):
    conv = jax.lax.conv_general_dilated(
        x_nchw, w_oihw, window_strides=(1, 1), padding="SAME",
        dimension_numbers=("NCHW", "OIHW", "NCHW"))
    conv = jnp.maximum(conv + bias[None, :, None, None], 0.0)
    return jnp.concatenate([conv, x_nchw], axis=1)


if __name__ == "__main__":
    key = jax.random.PRNGKey(0)
    kx, kw, kb = jax.random.split(key, 3)

    N, Cin, H, W = 2, 4, 16, 16
    Cout = 8

    x_nchw = jax.random.normal(kx, (N, Cin, H, W), jnp.float32)
    w_oihw = jax.random.normal(kw, (Cout, Cin, 3, 3), jnp.float32) * 0.1
    bias = jax.random.normal(kb, (Cout,), jnp.float32) * 0.1

    out = cat_sequential_nchw(x_nchw, w_oihw, bias)
    out = jax.block_until_ready(out)

    ref = _reference_nchw(x_nchw, w_oihw, bias)
    assert out.shape == (N, Cout + Cin, H, W), out.shape
    max_err = float(jnp.abs(out - ref).max())
    assert jnp.allclose(out, ref, atol=2e-3, rtol=2e-3), max_err

    print("KERNEL_OK")
</pallas_src>

<mosaic_0001>
module attributes {stable_mosaic.version = 11 : i64} {
  func.func @_cat_conv3x3_kernel(%arg0: i32, %arg1: i32, %arg2: memref<1x4x128xf32, #tpu.memory_space<vmem>>, %arg3: memref<1x1x8x16xf32, #tpu.memory_space<vmem>>, %arg4: memref<8x36xf32, #tpu.memory_space<vmem>>, %arg5: memref<8x1xf32, #tpu.memory_space<vmem>>, %arg6: memref<1x12x128xf32, #tpu.memory_space<vmem>>, %arg7: memref<36x128xf32, #tpu.memory_space<vmem>>) attributes {dimension_semantics = [#tpu.dimension_semantics<parallel>, #tpu.dimension_semantics<parallel>], iteration_bounds = array<i64: 2, 2>, scalar_prefetch = 0 : i64, scratch_operands = 1 : i64, tpu.core_type = #tpu.core_type<tc>, window_params = [{transform_indices = @transform_0, window_bounds = array<i64: 1, 4, 128>}, {transform_indices = @transform_1, window_bounds = array<i64: 1, 1, 8, 16>}, {pipeline_mode = #tpu.pipeline_mode<synchronous>, transform_indices = @transform_2, window_bounds = array<i64: 8, 36>}, {pipeline_mode = #tpu.pipeline_mode<synchronous>, transform_indices = @transform_3, window_bounds = array<i64: 8, 1>}, {transform_indices = @transform_4, window_bounds = array<i64: 1, 12, 128>}]} {
    %c0 = arith.constant 0 : index
    %c0_0 = arith.constant 0 : index
    %c0_1 = arith.constant 0 : index
    %0 = vector.load %arg2[%c0, %c0_0, %c0_1] : memref<1x4x128xf32, #tpu.memory_space<vmem>>, vector<1x4x128xf32>
    %1 = vector.shape_cast %0 : vector<1x4x128xf32> to vector<4x128xf32>
    %c0_2 = arith.constant 0 : index
    %c0_3 = arith.constant 0 : index
    %c0_4 = arith.constant 0 : index
    %c0_5 = arith.constant 0 : index
    %2 = vector.load %arg3[%c0_2, %c0_3, %c0_4, %c0_5] : memref<1x1x8x16xf32, #tpu.memory_space<vmem>>, vector<1x1x8x16xf32>
    %3 = vector.shape_cast %2 : vector<1x1x8x16xf32> to vector<8x16xf32>
    %4 = vector.extract_strided_slice %3 {offsets = [0, 0], sizes = [4, 16], strides = [1, 1]} : vector<8x16xf32> to vector<4x16xf32>
    %5 = vector.extract_strided_slice %3 {offsets = [4, 0], sizes = [4, 16], strides = [1, 1]} : vector<8x16xf32> to vector<4x16xf32>
    %6 = tpu.iota {dimensions = array<i32: 1>} : vector<1x128xi32>
    %c16_i32 = arith.constant 16 : i32
    %c0_i32 = arith.constant 0 : i32
    %7 = arith.cmpi eq, %c16_i32, %c0_i32 : i32
    %c1_i32 = arith.constant 1 : i32
    %8 = arith.select %7, %c1_i32, %c16_i32 : i32
    %9 = vector.broadcast %8 : i32 to vector<1x128xi32>
    %10 = arith.remsi %6, %9 : vector<1x128xi32>
    %c0_i32_6 = arith.constant 0 : i32
    %11 = vector.broadcast %c0_i32_6 : i32 to vector<1x128xi32>
    %12 = arith.cmpi ne, %10, %11 : vector<1x128xi32>
    %c0_i32_7 = arith.constant 0 : i32
    %13 = vector.broadcast %c0_i32_7 : i32 to vector<1x128xi32>
    %14 = arith.cmpi slt, %10, %13 : vector<1x128xi32>
    %c0_i32_8 = arith.constant 0 : i32
    %15 = arith.cmpi slt, %8, %c0_i32_8 : i32
    %16 = vector.broadcast %15 : i1 to vector<1x128xi1>
    %17 = vector.broadcast %16 : vector<1x128xi1> to vector<1x128xi1>
    %18 = arith.xori %14, %17 : vector<1x128xi1>
    %19 = arith.andi %18, %12 : vector<1x128xi1>
    %20 = vector.broadcast %8 : i32 to vector<1x128xi32>
    %21 = arith.addi %10, %20 : vector<1x128xi32>
    %22 = arith.select %19, %21, %10 : vector<1x128xi1>, vector<1x128xi32>
    %23 = tpu.iota {dimensions = array<i32: 1>} : vector<1x16xi32>
    %c17_i32 = arith.constant 17 : i32
    %24 = tpu.dynamic_rotate %1 by %c17_i32 dim 1 : vector<4x128xf32>, i32 -> vector<4x128xf32>
    %c1_i32_9 = arith.constant 1 : i32
    %25 = vector.broadcast %c1_i32_9 : i32 to vector<1x128xi32>
    %26 = arith.cmpi sge, %22, %25 : vector<1x128xi32>
    %cst = arith.constant 0.000000e+00 : f32
    %27 = vector.broadcast %cst : f32 to vector<4x128xf32>
    %28 = vector.shape_cast %26 : vector<1x128xi1> to vector<1x128xi1>
    %29 = vector.broadcast %28 : vector<1x128xi1> to vector<4x128xi1>
    %30 = arith.select %29, %24, %27 : vector<4x128xi1>, vector<4x128xf32>
    %c0_10 = arith.constant 0 : index
    %c0_11 = arith.constant 0 : index
    %31 = vector.load %arg7[%c0_10, %c0_11] : memref<36x128xf32, #tpu.memory_space<vmem>>, vector<4x128xf32>
    tpu.vector_store %arg7[%c0_10, %c0_11], %30 {strides = array<i32>} : memref<36x128xf32, #tpu.memory_space<vmem>>, vector<4x128xf32>,
    %c1_i32_12 = arith.constant 1 : i32
    %32 = vector.broadcast %c1_i32_12 : i32 to vector<1x16xi32>
    %33 = arith.cmpi sge, %23, %32 : vector<1x16xi32>
    %c1_i32_13 = arith.constant 1 : i32
    %34 = tpu.dynamic_rotate %4 by %c1_i32_13 dim 1 : vector<4x16xf32>, i32 -> vector<4x16xf32>
    %cst_14 = arith.constant 0.000000e+00 : f32
    %35 = vector.broadcast %cst_14 : f32 to vector<4x16xf32>
    %36 = vector.shape_cast %33 : vector<1x16xi1> to vector<1x16xi1>
    %37 = vector.broadcast %36 : vector<1x16xi1> to vector<4x16xi1>
    %38 = arith.select %37, %34, %35 : vector<4x16xi1>, vector<4x16xf32>
    %c0_15 = arith.constant 0 : index
    %c0_16 = arith.constant 0 : index
    %39 = vector.load %arg7[%c0_15, %c0_16] : memref<36x128xf32, #tpu.memory_space<vmem>>, vector<4x16xf32>
    tpu.vector_store %arg7[%c0_15, %c0_16], %38 {strides = array<i32>} : memref<36x128xf32, #tpu.memory_space<vmem>>, vector<4x16xf32>,
    %c16_i32_17 = arith.constant 16 : i32
    %40 = tpu.dynamic_rotate %1 by %c16_i32_17 dim 1 : vector<4x128xf32>, i32 -> vector<4x128xf32>
    %c4 = arith.constant 4 : index
    %c0_18 = arith.constant 0 : index
    %41 = vector.load %arg7[%c4, %c0_18] : memref<36x128xf32, #tpu.memory_space<vmem>>, vector<4x128xf32>
    tpu.vector_store %arg7[%c4, %c0_18], %40 {strides = array<i32>} : memref<36x128xf32, #tpu.memory_space<vmem>>, vector<4x128xf32>,
    %c4_19 = arith.constant 4 : index
    %c0_20 = arith.constant 0 : index
    %42 = vector.load %arg7[%c4_19, %c0_20] : memref<36x128xf32, #tpu.memory_space<vmem>>, vector<4x16xf32>
    tpu.vector_store %arg7[%c4_19, %c0_20], %4 {strides = array<i32>} : memref<36x128xf32, #tpu.memory_space<vmem>>, vector<4x16xf32>,
    %c15_i32 = arith.constant 15 : i32
    %43 = tpu.dynamic_rotate %1 by %c15_i32 dim 1 : vector<4x128xf32>, i32 -> vector<4x128xf32>
    %c14_i32 = arith.constant 14 : i32
    %44 = vector.broadcast %c14_i32 : i32 to vector<1x128xi32>
    %45 = arith.cmpi sle, %22, %44 : vector<1x128xi32>
    %cst_21 = arith.constant 0.000000e+00 : f32
    %46 = vector.broadcast %cst_21 : f32 to vector<4x128xf32>
    %47 = vector.shape_cast %45 : vector<1x128xi1> to vector<1x128xi1>
    %48 = vector.broadcast %47 : vector<1x128xi1> to vector<4x128xi1>
    %49 = arith.select %48, %43, %46 : vector<4x128xi1>, vector<4x128xf32>
    %c8 = arith.constant 8 : index
    %c0_22 = arith.constant 0 : index
    %50 = vector.load %arg7[%c8, %c0_22] : memref<36x128xf32, #tpu.memory_space<vmem>>, vector<4x128xf32>
    tpu.vector_store %arg7[%c8, %c0_22], %49 {strides = array<i32>} : memref<36x128xf32, #tpu.memory_space<vmem>>, vector<4x128xf32>,
    %c14_i32_23 = arith.constant 14 : i32
    %51 = vector.broadcast %c14_i32_23 : i32 to vector<1x16xi32>
    %52 = arith.cmpi sle, %23, %51 : vector<1x16xi32>
    %c15_i32_24 = arith.constant 15 : i32
    %53 = tpu.dynamic_rotate %4 by %c15_i32_24 dim 1 : vector<4x16xf32>, i32 -> vector<4x16xf32>
    %cst_25 = arith.constant 0.000000e+00 : f32
    %54 = vector.broadcast %cst_25 : f32 to vector<4x16xf32>
    %55 = vector.shape_cast %52 : vector<1x16xi1> to vector<1x16xi1>
    %56 = vector.broadcast %55 : vector<1x16xi1> to vector<4x16xi1>
    %57 = arith.select %56, %53, %54 : vector<4x16xi1>, vector<4x16xf32>
    %c8_26 = arith.constant 8 : index
    %c0_27 = arith.constant 0 : index
    %58 = vector.load %arg7[%c8_26, %c0_27] : memref<36x128xf32, #tpu.memory_space<vmem>>, vector<4x16xf32>
    tpu.vector_store %arg7[%c8_26, %c0_27], %57 {strides = array<i32>} : memref<36x128xf32, #tpu.memory_space<vmem>>, vector<4x16xf32>,
    %c1_i32_28 = arith.constant 1 : i32
    %59 = tpu.dynamic_rotate %1 by %c1_i32_28 dim 1 : vector<4x128xf32>, i32 -> vector<4x128xf32>
    %c1_i32_29 = arith.constant 1 : i32
    %60 = vector.broadcast %c1_i32_29 : i32 to vector<1x128xi32>
    %61 = arith.cmpi sge, %22, %60 : vector<1x128xi32>
    %cst_30 = arith.constant 0.000000e+00 : f32
    %62 = vector.broadcast %cst_30 : f32 to vector<4x128xf32>
    %63 = vector.shape_cast %61 : vector<1x128xi1> to vector<1x128xi1>
    %64 = vector.broadcast %63 : vector<1x128xi1> to vector<4x128xi1>
    %65 = arith.select %64, %59, %62 : vector<4x128xi1>, vector<4x128xf32>
    %c12 = arith.constant 12 : index
    %c0_31 = arith.constant 0 : index
    %66 = vector.load %arg7[%c12, %c0_31] : memref<36x128xf32, #tpu.memory_space<vmem>>, vector<4x128xf32>
    tpu.vector_store %arg7[%c12, %c0_31], %65 {strides = array<i32>} : memref<36x128xf32, #tpu.memory_space<vmem>>, vector<4x128xf32>,
    %c16 = arith.constant 16 : index
    %c0_32 = arith.constant 0 : index
    %67 = vector.load %arg7[%c16, %c0_32] : memref<36x128xf32, #tpu.memory_space<vmem>>, vector<4x128xf32>
    tpu.vector_store %arg7[%c16, %c0_32], %1 {strides = array<i32>} : memref<36x128xf32, #tpu.memory_space<vmem>>, vector<4x128xf32>,
    %c127_i32 = arith.constant 127 : i32
    %68 = tpu.dynamic_rotate %1 by %c127_i32 dim 1 : vector<4x128xf32>, i32 -> vector<4x128xf32>
    %c14_i32_33 = arith.constant 14 : i32
    %69 = vector.broadcast %c14_i32_33 : i32 to vector<1x128xi32>
    %70 = arith.cmpi sle, %22, %69 : vector<1x128xi32>
    %cst_34 = arith.constant 0.000000e+00 : f32
    %71 = vector.broadcast %cst_34 : f32 to vector<4x128xf32>
    %72 = vector.shape_cast %70 : vector<1x128xi1> to vector<1x128xi1>
    %73 = vector.broadcast %72 : vector<1x128xi1> to vector<4x128xi1>
    %74 = arith.select %73, %68, %71 : vector<4x128xi1>, vector<4x128xf32>
    %c20 = arith.constant 20 : index
    %c0_35 = arith.constant 0 : index
    %75 = vector.load %arg7[%c20, %c0_35] : memref<36x128xf32, #tpu.memory_space<vmem>>, vector<4x128xf32>
    tpu.vector_store %arg7[%c20, %c0_35], %74 {strides = array<i32>} : memref<36x128xf32, #tpu.memory_space<vmem>>, vector<4x128xf32>,
    %c113_i32 = arith.constant 113 : i32
    %76 = tpu.dynamic_rotate %1 by %c113_i32 dim 1 : vector<4x128xf32>, i32 -> vector<4x128xf32>
    %c1_i32_36 = arith.constant 1 : i32
    %77 = vector.broadcast %c1_i32_36 : i32 to vector<1x128xi32>
    %78 = arith.cmpi sge, %22, %77 : vector<1x128xi32>
    %cst_37 = arith.constant 0.000000e+00 : f32
    %79 = vector.broadcast %cst_37 : f32 to vector<4x128xf32>
    %80 = vector.shape_cast %78 : vector<1x128xi1> to vector<1x128xi1>
    %81 = vector.broadcast %80 : vector<1x128xi1> to vector<4x128xi1>
    %82 = arith.select %81, %76, %79 : vector<4x128xi1>, vector<4x128xf32>
    %c24 = arith.constant 24 : index
    %c0_38 = arith.constant 0 : index
    %83 = vector.load %arg7[%c24, %c0_38] : memref<36x128xf32, #tpu.memory_space<vmem>>, vector<4x128xf32>
    tpu.vector_store %arg7[%c24, %c0_38], %82 {strides = array<i32>} : memref<36x128xf32, #tpu.memory_space<vmem>>, vector<4x128xf32>,
    %c1_i32_39 = arith.constant 1 : i32
    %84 = vector.broadcast %c1_i32_39 : i32 to vector<1x16xi32>
    %85 = arith.cmpi sge, %23, %84 : vector<1x16xi32>
    %c1_i32_40 = arith.constant 1 : i32
    %86 = tpu.dynamic_rotate %5 by %c1_i32_40 dim 1 : vector<4x16xf32>, i32 -> vector<4x16xf32>
    %cst_41 = arith.constant 0.000000e+00 : f32
    %87 = vector.broadcast %cst_41 : f32 to vector<4x16xf32>
    %88 = vector.shape_cast %85 : vector<1x16xi1> to vector<1x16xi1>
    %89 = vector.broadcast %88 : vector<1x16xi1> to vector<4x16xi1>
    %90 = arith.select %89, %86, %87 : vector<4x16xi1>, vector<4x16xf32>
    %c24_42 = arith.constant 24 : index
    %c112 = arith.constant 112 : index
    %91 = vector.load %arg7[%c24_42, %c112] : memref<36x128xf32, #tpu.memory_space<vmem>>, vector<4x16xf32>
    tpu.vector_store %arg7[%c24_42, %c112], %90 {strides = array<i32>} : memref<36x128xf32, #tpu.memory_space<vmem>>, vector<4x16xf32>,
    %c112_i32 = arith.constant 112 : i32
    %92 = tpu.dynamic_rotate %1 by %c112_i32 dim 1 : vector<4x128xf32>, i32 -> vector<4x128xf32>
    %c28 = arith.constant 28 : index
    %c0_43 = arith.constant 0 : index
    %93 = vector.load %arg7[%c28, %c0_43] : memref<36x128xf32, #tpu.memory_space<vmem>>, vector<4x128xf32>
    tpu.vector_store %arg7[%c28, %c0_43], %92 {strides = array<i32>} : memref<36x128xf32, #tpu.memory_space<vmem>>, vector<4x128xf32>,
    %c28_44 = arith.constant 28 : index
    %c112_45 = arith.constant 112 : index
    %94 = vector.load %arg7[%c28_44, %c112_45] : memref<36x128xf32, #tpu.memory_space<vmem>>, vector<4x16xf32>
    tpu.vector_store %arg7[%c28_44, %c112_45], %5 {strides = array<i32>} : memref<36x128xf32, #tpu.memory_space<vmem>>, vector<4x16xf32>,
    %c111_i32 = arith.constant 111 : i32
    %95 = tpu.dynamic_rotate %1 by %c111_i32 dim 1 : vector<4x128xf32>, i32 -> vector<4x128xf32>
    %c14_i32_46 = arith.constant 14 : i32
    %96 = vector.broadcast %c14_i32_46 : i32 to vector<1x128xi32>
    %97 = arith.cmpi sle, %22, %96 : vector<1x128xi32>
    %cst_47 = arith.constant 0.000000e+00 : f32
    %98 = vector.broadcast %cst_47 : f32 to vector<4x128xf32>
    %99 = vector.shape_cast %97 : vector<1x128xi1> to vector<1x128xi1>
    %100 = vector.broadcast %99 : vector<1x128xi1> to vector<4x128xi1>
    %101 = arith.select %100, %95, %98 : vector<4x128xi1>, vector<4x128xf32>
    %c32 = arith.constant 32 : index
    %c0_48 = arith.constant 0 : index
    %102 = vector.load %arg7[%c32, %c0_48] : memref<36x128xf32, #tpu.memory_space<vmem>>, vector<4x128xf32>
    tpu.vector_store %arg7[%c32, %c0_48], %101 {strides = array<i32>} : memref<36x128xf32, #tpu.memory_space<vmem>>, vector<4x128xf32>,
    %c14_i32_49 = arith.constant 14 : i32
    %103 = vector.broadcast %c14_i32_49 : i32 to vector<1x16xi32>
    %104 = arith.cmpi sle, %23, %103 : vector<1x16xi32>
    %c15_i32_50 = arith.constant 15 : i32
    %105 = tpu.dynamic_rotate %5 by %c15_i32_50 dim 1 : vector<4x16xf32>, i32 -> vector<4x16xf32>
    %cst_51 = arith.constant 0.000000e+00 : f32
    %106 = vector.broadcast %cst_51 : f32 to vector<4x16xf32>
    %107 = vector.shape_cast %104 : vector<1x16xi1> to vector<1x16xi1>
    %108 = vector.broadcast %107 : vector<1x16xi1> to vector<4x16xi1>
    %109 = arith.select %108, %105, %106 : vector<4x16xi1>, vector<4x16xf32>
    %c32_52 = arith.constant 32 : index
    %c112_53 = arith.constant 112 : index
    %110 = vector.load %arg7[%c32_52, %c112_53] : memref<36x128xf32, #tpu.memory_space<vmem>>, vector<4x16xf32>
    tpu.vector_store %arg7[%c32_52, %c112_53], %109 {strides = array<i32>} : memref<36x128xf32, #tpu.memory_space<vmem>>, vector<4x16xf32>,
    %c0_54 = arith.constant 0 : index
    %c0_55 = arith.constant 0 : index
    %111 = vector.load %arg4[%c0_54, %c0_55] : memref<8x36xf32, #tpu.memory_space<vmem>>, vector<8x36xf32>
    %c0_56 = arith.constant 0 : index
    %c0_57 = arith.constant 0 : index
    %112 = vector.load %arg7[%c0_56, %c0_57] : memref<36x128xf32, #tpu.memory_space<vmem>>, vector<36x128xf32>
    %cst_58 = arith.constant dense<0.000000e+00> : vector<8x128xf32>
    %113 = tpu.matmul %111, %112, %cst_58 {dimension_numbers = #tpu.dot_dimension_numbers<[1], [0], [0], [1], [0, 0, 1, 1], [], []>} : vector<8x36xf32>, vector<36x128xf32>, vector<8x128xf32> -> vector<8x128xf32>
    %c0_59 = arith.constant 0 : index
    %c0_60 = arith.constant 0 : index
    %114 = vector.load %arg5[%c0_59, %c0_60] : memref<8x1xf32, #tpu.memory_space<vmem>>, vector<8x1xf32>
    %115 = vector.broadcast %114 : vector<8x1xf32> to vector<8x128xf32>
    %116 = arith.addf %113, %115 : vector<8x128xf32>
    %cst_61 = arith.constant 0.000000e+00 : f32
    %117 = vector.broadcast %cst_61 : f32 to vector<8x128xf32>
    %118 = arith.maximumf %116, %117 : vector<8x128xf32>
    %c0_62 = arith.constant 0 : index
    %c0_63 = arith.constant 0 : index
    %c0_64 = arith.constant 0 : index
    %119 = vector.load %arg6[%c0_62, %c0_63, %c0_64] : memref<1x12x128xf32, #tpu.memory_space<vmem>>, vector<1x8x128xf32>
    %120 = vector.shape_cast %119 : vector<1x8x128xf32> to vector<8x128xf32>
    %121 = vector.shape_cast %118 : vector<8x128xf32> to vector<1x8x128xf32>
    tpu.vector_store %arg6[%c0_62, %c0_63, %c0_64], %121 {strides = array<i32>} : memref<1x12x128xf32, #tpu.memory_space<vmem>>, vector<1x8x128xf32>,
    %c0_65 = arith.constant 0 : index
    %c8_66 = arith.constant 8 : index
    %c0_67 = arith.constant 0 : index
    %122 = vector.load %arg6[%c0_65, %c8_66, %c0_67] : memref<1x12x128xf32, #tpu.memory_space<vmem>>, vector<1x4x128xf32>
    %123 = vector.shape_cast %122 : vector<1x4x128xf32> to vector<4x128xf32>
    %124 = vector.shape_cast %1 : vector<4x128xf32> to vector<1x4x128xf32>
    tpu.vector_store %arg6[%c0_65, %c8_66, %c0_67], %124 {strides = array<i32>} : memref<1x12x128xf32, #tpu.memory_space<vmem>>, vector<1x4x128xf32>,
    return
  }
  func.func @transform_0(%arg0: i32, %arg1: i32) -> (i32, i32, i32) {
    %c0_i32 = arith.constant 0 : i32
    %c0_i32_0 = arith.constant 0 : i32
    return %arg0, %c0_i32, %arg1 : i32, i32, i32
  }
  func.func @transform_1(%arg0: i32, %arg1: i32) -> (i32, i32, i32, i32) {
    %c0_i32 = arith.constant 0 : i32
    %c0_i32_0 = arith.constant 0 : i32
    %c0_i32_1 = arith.constant 0 : i32
    return %arg0, %arg1, %c0_i32, %c0_i32_0 : i32, i32, i32, i32
  }
  func.func @transform_2(%arg0: i32, %arg1: i32) -> (i32, i32) {
    %c0_i32 = arith.constant 0 : i32
    %c0_i32_0 = arith.constant 0 : i32
    %c0_i32_1 = arith.constant 0 : i32
    return %c0_i32, %c0_i32_0 : i32, i32
  }
  func.func @transform_3(%arg0: i32, %arg1: i32) -> (i32, i32) {
    %c0_i32 = arith.constant 0 : i32
    %c0_i32_0 = arith.constant 0 : i32
    %c0_i32_1 = arith.constant 0 : i32
    return %c0_i32, %c0_i32_0 : i32, i32
  }
  func.func @transform_4(%arg0: i32, %arg1: i32) -> (i32, i32, i32) {
    %c0_i32 = arith.constant 0 : i32
    %c0_i32_0 = arith.constant 0 : i32
    return %arg0, %c0_i32, %arg1 : i32, i32, i32
  }
}

</mosaic_0001>

<bundles_post_ra>
// kernel: tpu_custom_call.1
= control target key start
LH: loop header
LB: loop body
LE: loop exit
PB: predicated region body
PF: predicated region fallthrough
CT: control target
= control target key end

     0   :  { %9 = vsyncpa [#allocation4], 0  ;;  %s1208_s0 = inlined_call_operand.hbm [shape: f32[2,4,256], index: 0, kind: input, shape index: {}]   ;;  %s1209_s1 = inlined_call_operand.hbm [shape: f32[2,2,8,16], index: 1, kind: input, shape index: {}]   ;;  %s1210_s2 = inlined_call_operand.vmem [shape: f32[8,36], index: 2, kind: input, shape index: {}]   ;;  %s1211_s3 = inlined_call_operand.vmem [shape: f32[8,1], index: 3, kind: input, shape index: {}]   ;;  %s1212_s4 = inlined_call_operand.vmem [shape: f32[2,12,256], index: 4, kind: output, shape index: {}]  }
   0x1   :  { %11 = vsyncpa [#allocation4 + $0x1], 0 }
   0x2   :  { %12 = vsyncpa [#allocation6], 0 }
   0x3   :  { %14 = vsyncpa [#allocation6 + $0x1], 0  ;;  %s930_s15 = smov 0   ;;  %s932_s16 = smov 0  }
   0x4   :  { %s934_s17 = smov 0   ;;  %s936_s18 = smov 0  }
   0x5   :  { %s938_s19 = smov 0   ;;  %s940_s20 = smov 0  }
   0x6   :  { %s942_s21 = smov 0   ;;  %s944_s22 = smov 0  }
   0x7 LB: > { %s623_s23 = sadd.s32 4294967295, %s889_s22   ;;  %s29_s24 = sadd.s32 1, %s881_s20  ;;  %s889_s22 = sphi %s944_s22, %s20_s22   ;;  %s885_s21 = sphi %s942_s21, %s1234_s21   ;;  %s881_s20 = sphi %s940_s20, %s1233_s20   ;;  %s877_s19 = sphi %s938_s19, %s1232_s19   ;;  %s873_s18 = sphi %s936_s18, %s1231_s18   ;;  %s869_s17 = sphi %s934_s17, %s1230_s17   ;;  %s865_s16 = sphi %s932_s16, %s1229_s16   ;;  %s861_s15 = sphi %s930_s15, %s1228_s15  }
   0x8   : > { %p30_p0 = scmp.ge.s32.totalorder %s29_s24, 2  ;;  %s32_s25 = sadd.s32 1, %s885_s21 }
   0x9   : > { %s41_s26 = sadd.s32 1, %s869_s17  ;;  %p48_p1 = scmp.ne.s32.totalorder %s869_s17, %s865_s16 }
   0xa   : > { %s1236_s24 = smov (%p30_p0, %s29_s24), 0  ;;  %s1238_s25 = smov (!%p30_p0, %s32_s25), %s885_s21 }
   0xb   : > { %s37_s27 = ssub.s32 %s881_s20, %s1236_s24  ;;  %p49_p2 = scmp.eq.s32.totalorder %s889_s22, 0 }
   0xc   : > { %p34_p3 = scmp.ge.s32.totalorder %s1238_s25, 2  ;;  %p54_p4 = scmp.ne.s32.totalorder %s865_s16, %s861_s15 }
   0xd   : > { %p984_p5 = por %p49_p2, %p48_p1  ;;  %p55_p6 = scmp.eq.s32.totalorder %s623_s23, 0 }
   0xe   : > { %s1240_s25 = smov (%p34_p3, %s1238_s25), 0  ;;  %p150_p8 = scmp.eq.s32.totalorder %s623_s23, 3 }
   0xf   : > { %p990_p7 = por %p55_p6, %p54_p4  ;;  %s36_s30 = ssub.s32 %s885_s21, %s1240_s25 }
  0x10   : > { %s38_s5 = sor.u32 %s37_s27, %s36_s30  ;;  %p999_p9 = por %p150_p8, %p48_p1 }
  0x11   : > { %s1215_s29 = scalar_select %p990_p7, 1, 0 }
  0x12   : > { %s1216_s6 = scalar_select %p999_p9, 1, 0 }
  0x13   : > { %p39_p10 = scmp.eq.s32.totalorder %s38_s5, 0  ;;  %p680_p11 = scmp.lt.s32.totalorder %s889_s22, 4 }
  0x14   : > { %s1005_s7 = sand.u32 1, %s869_s17   ;;  %s628_s8 = sshll.u32 %s885_s21, 1 }
  0x15   : > { %s1009_s9 = scalar_select %p39_p10, %s869_s17, %s41_s26  }
  0x16   : > { %s627_s10 = sshll.u32 %s1005_s7, 2  ;;  %s1013_s11 = sadd.s32 %s881_s20, %s628_s8 }
  0x17   : > { %s629_s12 = sshll.u32 %s1013_s11, 6  ;;  %s186_s13 = scalar_lea.vmem [#allocation3], %s627_s10 }
  0x18   : > { %s195_s14 = sshll.u32 %s186_s13, 4  ;;  %s1019_s27 = scalar_lea.hbm %s1208_s0, %s629_s12  ;;  %s1021_s14 = int_to_ptr.vmem [resolvable:$true] %s195_s14 }
  0x19   : > { %p1025_p12 = pnand %p680_p11, %p984_p5  ;;  %s630_s30 = sshll.u32 %s1005_s7, 3 }
  0x1a   : > { %s183_s5 = scalar_lea.sflag [#allocation4], %s1005_s7  ;;  %s759_s8 = scalar_lea.hbm %s1019_s27, 64 }
  0x1b   : > { %p760_p1 = scmp.ne.s32.totalorder %s1019_s27, %s759_s8  ;;  %p761_p2 = pneg %p1025_p12 }
  0x1c   : > { %s764_s12 = scalar_lea.hbm %s1208_s0, 256  ;;  %p765_p5 = scmp.lt.u32.totalorder %s1019_s27, %s1208_s0 }
  0x1d   : > { %p762_p3 = pnand %p761_p2, %p760_p1  ;;  %p766_p6 = scmp.lt.u32.totalorder %s764_s12, %s759_s8 }
  0x1e   : > { %p768_p10 = scmp.lt.u32.totalorder %s759_s8, %s1019_s27 }
  0x1f   : > { %p763_p4 = pneg %p762_p3  ;;  %p767_p8 = por %p766_p6, %p765_p5 }
  0x21   : > { %p769_p11 = por %p768_p10, %p767_p8 }
  0x23   : > { %p770_p13 = pnand %p769_p11, %p763_p4 }
  0x25   : > { %773 = shalt.err (!%p770_p13)
}
  0x26   : > { %s774_s23 = scalar_lea.vmem %s1021_s14, 64  ;;  %s891_s10 = smov [#allocation3]  }
  0x27   : > { %p775_p1 = scmp.ne.s32.totalorder %s1021_s14, %s774_s23  ;;  %s779_s28 = sshll.u32 %s891_s10, 4  ;;  %s780_s28 = int_to_ptr.vmem [resolvable:$false] %s779_s28 }
  0x28   : > { %s781_s13 = scalar_lea.vmem %s780_s28, 128  ;;  %p782_p9 = scmp.lt.s32.totalorder %s1021_s14, %s780_s28 }
  0x29   : > { %p777_p3 = pnand %p775_p1, %p761_p2  ;;  %p783_p5 = scmp.lt.s32.totalorder %s781_s13, %s774_s23 }
  0x2b   : > { %p778_p0 = pneg %p777_p3  ;;  %p784_p6 = por %p783_p5, %p782_p9 }
  0x2d   : > { %p785_p8 = pnand %p784_p6, %p778_p0 }
  0x2f   : > { %788 = shalt.err (!%p785_p8)
}
  0x30   : > { %676 = dma.hbm_to_vmem [thread:$0]  (!%p1025_p12), %s1019_s27, 64, %s1021_s14, %s183_s5  }
  0x31   : > { %p1218_p13 = scmp.lt.s32.totalorder %s889_s22, 5  ;;  %p1219_p4 = scmp.ge.s32.totalorder %s889_s22, 1 }
  0x32   : > { %s632_s12 = sshll.u32 %s1013_s11, 7  ;;  %s206_s15 = scalar_lea.vmem [#allocation5], %s630_s30 }
  0x33   : > { %p1062_p10 = pnand %p1219_p4, %p1218_p13  ;;  %s215_s23 = sshll.u32 %s206_s15, 4  ;;  %s216_s23 = int_to_ptr.vmem [resolvable:$true] %s215_s23 }
  0x34   : > { %s1072_s13 = scalar_lea.hbm %s1209_s1, %s632_s12  ;;  %s203_s14 = scalar_lea.sflag [#allocation6], %s1005_s7 }
  0x35   : > { %s1220_s8 = scalar_select %p1062_p10, 1, 0 }
  0x36   : > { %s789_s27 = scalar_lea.hbm %s1072_s13, 128  ;;  %s794_s5 = scalar_lea.hbm %s1209_s1, 512 }
  0x37   : > { %p790_p9 = scmp.ne.s32.totalorder %s1072_s13, %s789_s27  ;;  %p795_p1 = scmp.lt.u32.totalorder %s1072_s13, %s1209_s1 }
  0x38   : > { %p796_p3 = scmp.lt.u32.totalorder %s794_s5, %s789_s27  ;;  %p798_p6 = scmp.lt.u32.totalorder %s789_s27, %s1072_s13 }
  0x39   : > { %p792_p0 = pnand %p790_p9, %p761_p2 }
  0x3a   : > { %p797_p5 = por %p796_p3, %p795_p1 }
  0x3b   : > { %p793_p11 = pneg %p792_p0 }
  0x3c   : > { %p799_p8 = por %p798_p6, %p797_p5 }
  0x3e   : > { %p800_p13 = pnand %p799_p8, %p793_p11 }
  0x40   : > { %803 = shalt.err (!%p800_p13)
}
  0x41   : > { %s804_s7 = scalar_lea.vmem %s216_s23, 128  ;;  %s892_s12 = smov [#allocation5]  }
  0x42   : > { %p805_p4 = scmp.ne.s32.totalorder %s216_s23, %s804_s7  ;;  %s809_s28 = sshll.u32 %s892_s12, 4  ;;  %s810_s28 = int_to_ptr.vmem [resolvable:$false] %s809_s28 }
  0x43   : > { %s811_s11 = scalar_lea.vmem %s810_s28, 256  ;;  %p812_p7 = scmp.lt.s32.totalorder %s216_s23, %s810_s28 }
  0x44   : > { %p807_p9 = pnand %p805_p4, %p761_p2  ;;  %p813_p10 = scmp.lt.s32.totalorder %s811_s11, %s804_s7 }
  0x46   : > { %p808_p0 = pneg %p807_p9  ;;  %p814_p1 = por %p813_p10, %p812_p7 }
  0x48   : > { %p815_p3 = pnand %p814_p1, %p808_p0 }
  0x4a   : > { %818 = shalt.err (!%p815_p3)
}
  0x4b   : > { %679 = dma.hbm_to_vmem [thread:$0]  (!%p1025_p12), %s1072_s13, 128, %s216_s23, %s203_s14  }
  0x4c   : > { %p1221_p11 = scmp.ne.s32.totalorder %s1220_s8, 0 }
  0x4d   : > { %s1097_s27 = sand.u32 (!%p1221_p11), 1, %s865_s16   ;;  %p1222_p2 = scmp.ne.s32.totalorder (!%p1221_p11), %s1215_s29, 0 }
  0x4e   : > { %224 = sbr.rel (%p1221_p11) target bundleno = 795 (0x31b), region = 36  ;;  %s634_s30 = sshll.u32 (!%p1221_p11), %s1097_s27, 2 }
  0x4f   : > { %s227_s5 = scalar_lea.sflag (!%p1221_p11), [#allocation4], %s1097_s27  ;;  %s230_s15 = scalar_lea.vmem (!%p1221_p11), [#allocation3], %s634_s30 }
  0x55   : > { %852 = dma.done.wait (%p1222_p2), %s227_s5, 64  }
  0x56   : > { %854 = vsyncadd (%p1222_p2), %s227_s5, 4294967232  ;;  %s635_s26 = sshll.u32 %s1097_s27, 3  ;;  %s236_s8 = scalar_lea.sflag [#allocation6], %s1097_s27 }
  0x57   : > { %s239_s23 = scalar_lea.vmem [#allocation5], %s635_s26 }
  0x58   : > { %856 = dma.done.wait (%p1222_p2), %s236_s8, 128  }
  0x59   : > { %858 = vsyncadd (%p1222_p2), %s236_s8, 4294967168  ;;  %v1111_v0 = vld [vmem:[%s239_s23] sm:$0xff]  ;;  %s893_s13 = smov 16   ;;  %v1115_v2 = vld [vmem:[%s230_s15] sm:$0xf]  ;;  %vm292_vm0 = vcmask 1047680   ;;  %v270_v12 = vlaneseq }
  0x5a   : > { %v341_v1 = vrot.slane %v1111_v0, 4  ;;  %331 = vst [vmem:[#allocation2 + $0x10] sm:$0xf] %v1115_v2  ;;  %s894_s29 = smov 113   ;;  %s895_s14 = smov 127   ;;  %v898_v11 = vmov 0.0|0.0  }
  0x5b   : > { %s896_s10 = smov 15   ;;  %s897_s7 = smov 17   ;;  %663 = vmatprep.subr.bf16.mxu0 %v898_v11  ;;  %v271_v13 = vand.u32 127, %v270_v12  ;;  %vm901_vm5 = vmmov 0   ;;  %v902_v21 = vmov 0.0   ;;  %v903_v26 = vmov 0  }
  0x5c   : > { %343 = vrot.lane.b32.xlu0 %v341_v1, %s893_s13  ;;  %s899_s12 = smov 1   ;;  %s900_s28 = smov 112   ;;  %660 = vmatprep.mubr.msk.f32.mxu0 %vm901_vm5, %v902_v21  ;;  %vm306_vm6 = vcmask 125952   ;;  %v387_v27 = vld [vmem:[%s1211_s3] sm:$0xff]  ;;  %vm366_vm7 = vcmask 1048452   ;;  %vm358_vm8 = vcmask 1044352  }
  0x5d   : > { %vm319_vm1 = vcmp.le.s32.totalorder %v271_v13, 14  ;;  %vm291_vm2 = vcmp.ge.s32.totalorder %v271_v13, 1  ;;  %v276_v14 = vand.u32 15, %v271_v13  ;;  %757 = vset.pattern.permute.xlu1 %v903_v26  ;;  %758 = vset.pattern.permute.xlu0 %v903_v26  ;;  %s904_s11 = smov 111   ;;  %s636_s15 = sshll.u32 %s1097_s27, 4  ;;  %vm397_vm9 = vcmask 1043456  }
  0x5e   : > { %s1156_s26 = scalar_lea.vmem [#allocation7], %s636_s15  ;;  %v381_v51 = vld [vmem:[%s1210_s2] sm:$0xff]  ;;  %vm393_vm10 = vcmask 293888   ;;  %p1227_p7 = scmp.ne.s32.totalorder %s1216_s6, 0 }
  0x5f   : > { %vm1135_vm3 = vcmp.le.s32.totalorder %v276_v14, 14  ;;  %vm1139_vm4 = vcmp.ge.s32.totalorder %v276_v14, 1  ;;  %473 = vst [vmem:[%s1156_s26 + $0x8] sm:$0xf] %v1115_v2  ;;  %s640_s23 = sshll.u32 (%p1227_p7), %s877_s19, 2 }
  0x60   : > { %293 = vrot.lane.b32.xlu0 %v1111_v0, %s893_s13 }
  0x66   : > { %v516_v59 = vld [vmem:[%s1156_s26 + $0x8] sm:$0xff] (%p1227_p7) }
  0xce   : > { %v344_v3 = vpop.permute.xlu0 %343 }
  0xcf   : > { %v345_v4 = vsel %vm292_vm0, %v344_v3, %v341_v1 }
  0xd0   : > { %346 = vrot.lane.b32.xlu1 %v345_v4, %s893_s13 }
  0xd2   : > { %v294_v5 = vpop.permute.xlu0 %293 }
  0xd3   : > { %v295_v6 = vsel %vm292_vm0, %v294_v5, %v1111_v0 }
  0xd4   : > { %296 = vrot.lane.b32.xlu1 %v295_v6, %s893_s13 }
 0x142   : > { %v347_v7 = vpop.permute.xlu1 %346 }
 0x143   : > { %v348_v8 = vsel %vm292_vm0, %v347_v7, %v341_v1 }
 0x144   : > { %350 = vrot.lane.b32.xlu0 %v348_v8, %s894_s29  ;;  %372 = vrot.lane.b32.xlu1 %v348_v8, %s895_s14 }
 0x146   : > { %v297_v9 = vpop.permute.xlu1 %296 }
 0x147   : > { %v298_v10 = vsel %vm292_vm0, %v297_v9, %v1111_v0 }
 0x148   : > { %312 = vrot.lane.b32.xlu1 %v1115_v2, %s896_s10  ;;  %284 = vrot.lane.b32.xlu0 %v1115_v2, %s897_s7 }
 0x14c   : > { %308 = vrot.lane.b32.xlu1 %v1115_v2, %s893_s13  ;;  %302 = vrot.lane.b32.xlu0 %v298_v10, %s894_s29  ;;  %s482_s13 = sadd.s32 (%p1227_p7), %s873_s18, %s640_s23 }
 0x150   : > { %327 = vrot.lane.b32.xlu1 %v1115_v2, %s899_s12  ;;  %322 = vrot.lane.b32.xlu0 %v298_v10, %s895_s14 }
 0x154   : > { %336 = vrot.lane.b32.xlu0 %v1115_v2, %s894_s29  ;;  %332 = vrot.lane.b32.xlu1 %v1115_v2, %s895_s14  ;;  %s641_s29 = sshll.u32 (%p1227_p7), %s482_s13, 3 }
 0x155   : > { %s484_s7 = scalar_lea.vmem (%p1227_p7), %s1212_s4, %s641_s29 }
 0x156   : > { %517 = vst [vmem:[%s484_s7 + $0x10] sm:$0xff] (%p1227_p7), %v516_v59 }
 0x158   : > { %360 = vrot.lane.b32.xlu0 %v1115_v2, %s900_s28 }
 0x15c   : > { %363 = vrot.lane.b32.xlu0 %v1111_v0, %s900_s28 }
 0x1b6   : > { %v373_v15 = vpop.permute.xlu1 %372  ;;  %v351_v16 = vpop.permute.xlu0 %350 }
 0x1b7   : > { %v375_v17 = vsel %vm319_vm1, %v373_v15, 0.0  ;;  %v353_v18 = vsel %vm291_vm2, %v351_v16, 0.0 }
 0x1b8   : > { %355 = vrot.lane.b32.xlu1 %v353_v18, %s900_s28  ;;  %377 = vrot.lane.b32.xlu0 %v375_v17, %s900_s28 }
 0x1ba   : > { %v313_v22 = vpop.permute.xlu1 %312  ;;  %v285_v23 = vpop.permute.xlu0 %284 }
 0x1bb   : > { %v317_v24 = vsel %vm1135_vm3, %v313_v22, 0.0  ;;  %v289_v25 = vsel %vm1139_vm4, %v285_v23, 0.0 }
 0x1bc   : > { %368 = vrot.lane.b32.xlu1 %v1115_v2, %s904_s11  ;;  %318 = vst [vmem:[#allocation2 + $0x8] sm:$0xf] %v317_v24  ;;  %290 = vst [vmem:[#allocation2] sm:$0xf] %v289_v25 }
 0x1be   : > { %v309_v28 = vpop.permute.xlu1 %308  ;;  %v303_v29 = vpop.permute.xlu0 %302 }
 0x1bf   : > { %310 = vst [vmem:[#allocation2 + $0x4] sm:$0xf] %v309_v28  ;;  %v305_v30 = vsel %vm291_vm2, %v303_v29, 0.0 }
 0x1c0   : > { %311 = vst.msk [vmem:[#allocation2 + $0x4] sm:$0xf] %vm306_vm6, %v1111_v0  ;;  %307 = vst.msk [vmem:[#allocation2] sm:$0xf] %vm306_vm6, %v305_v30  ;;  %390 = vperm.xlu1 %757, %v387_v27  }
 0x1c2   : > { %v328_v31 = vpop.permute.xlu1 %327  ;;  %v323_v32 = vpop.permute.xlu0 %322 }
 0x1c3   : > { %v329_v33 = vsel %vm1139_vm4, %v328_v31, 0.0  ;;  %v325_v34 = vsel %vm319_vm1, %v323_v32, 0.0 }
 0x1c4   : > { %330 = vst [vmem:[#allocation2 + $0xc] sm:$0xf] %v329_v33  ;;  %326 = vst.msk [vmem:[#allocation2 + $0x8] sm:$0xf] %vm306_vm6, %v325_v34 }
 0x1c6   : > { %v337_v35 = vpop.permute.xlu0 %336  ;;  %v333_v36 = vpop.permute.xlu1 %332 }
 0x1c7   : > { %v338_v37 = vsel %vm1139_vm4, %v337_v35, 0.0  ;;  %v334_v38 = vsel %vm1135_vm3, %v333_v36, 0.0  ;;  %v382_v39 = vld [vmem:[#allocation2] sm:$0xff] }
 0x1c8   : > { %339 = vst [vmem:[#allocation2 + $0x18] sm:$0xf] %v338_v37  ;;  %335 = vst [vmem:[#allocation2 + $0x14] sm:$0xf] %v334_v38 }
 0x1ca   : > { %v361_v40 = vpop.permute.xlu0 %360 }
 0x1cb   : > { %362 = vst [vmem:[#allocation2 + $0x1c] sm:$0xf] %v361_v40  ;;  %v383_v41 = vld [vmem:[#allocation2 + $0x8] sm:$0xff] }
 0x1cc   : > { %v664_v42 = vpack.c.bf16 %v383_v41, %v382_v39 }
 0x1ce   : > { %665 = vmatpush3.bf16.msra.mxu0 %v664_v42  ;;  %v364_v43 = vpop.permute.xlu0 %363 }
 0x1cf   : > { %367 = vst.msk [vmem:[#allocation2 + $0x18] sm:$0xf0] %vm366_vm7, %v364_v43  ;;  %666 = vmatprep.subr.bf16.mxu0 %v898_v11  ;;  %v384_v48 = vld [vmem:[#allocation2 + $0x10] sm:$0xff] }
 0x22a   : > { %v356_v44 = vpop.permute.xlu1 %355  ;;  %v378_v47 = vpop.permute.xlu0 %377 }
 0x22b   : > { %359 = vst.msk [vmem:[#allocation2 + $0x18] sm:$0xf] %vm358_vm8, %v356_v44 }
 0x22e   : > { %v369_v45 = vpop.permute.xlu1 %368 }
 0x22f   : > { %v370_v46 = vsel %vm1135_vm3, %v369_v45, 0.0 }
 0x230   : > { %371 = vst [vmem:[#allocation2 + $0x20] sm:$0xf] %v370_v46 }
 0x231   : > { %380 = vst.msk [vmem:[#allocation2 + $0x20] sm:$0xf] %vm358_vm8, %v378_v47 }
 0x232   : > { %v385_v49 = vld [vmem:[#allocation2 + $0x18] sm:$0xff] }
 0x233   : > { %v667_v50 = vpack.c.bf16 %v385_v49, %v384_v48 }
 0x235   : > { %668 = vmatpush3.bf16.msra.mxu0 %v667_v50 }
 0x236   : > { %658 = vmatprep.subr.mxu0 %v902_v21 }
 0x238   : > { %v386_v52 = vld [vmem:[#allocation2 + $0x20] sm:$0xf] }
 0x239   : > { %659 = vmatpush3.msk.msra.mxu0 %vm397_vm9, %v386_v52 }
 0x23a   : > { %661 = vmatmul.mubr.msk.f32.vlgmr.msra.gmra.mrb[0].mxu0 %vm393_vm10, %v381_v51 }
 0x23f   : > { %v391_v53 = vpop.permute.xlu1 %390 }
 0x30c   : > { %480 = sbr.rel (!%p1227_p7) target bundleno = 795 (0x31b), region = 48 }
 0x30d   : > { %v467_v54 = vpop.f32.mrb[0].mxu0 }
 0x30e   : > { %v468_v55 = vadd.f32 %v467_v54, %v391_v53  ;;  %v662_v56 = vpop.f32.mrb[1].mxu0 }
 0x310   : > { %v471_v57 = vmax.f32 %v468_v55, 0.0 }
 0x312   : > { %472 = vst [vmem:[%s1156_s26] sm:$0xff] %v471_v57 }
 0x319   : > { %v514_v58 = vld [vmem:[%s1156_s26] sm:$0xff] }
 0x31a   : > { %515 = vst [vmem:[%s484_s7] sm:$0xff] %v514_v58 }
 0x31b PF: > { %s20_s22 = sadd.s32 1, %s889_s22   ;;  %s1228_s15 = smov %s865_s16 }
 0x31c   : > { %p17_p12 = scmp.ge.s32.totalorder %s20_s22, 6   ;;  %s1229_s16 = smov %s869_s17 }
 0x31d   : > { %s1230_s17 = smov %s1009_s9  ;;  %s1231_s18 = smov %s881_s20 }
 0x31e   : > { %s1232_s19 = smov %s885_s21  ;;  %s1233_s20 = smov %s1236_s24 }
 0x31f   : > { %s1234_s21 = smov %s1240_s25  ;;  %19 = sbr.rel (!%p17_p12) target bundleno = 7 (0x7), region = 127 }
 0x326   :  { %533 = vsyncpa [#allocation4], 1 }
 0x327   :  { %535 = vsyncpa [#allocation4 + $0x1], 1 }
 0x328   :  { %536 = vsyncpa [#allocation6], 1 }
 0x329   :  { %538 = vsyncpa [#allocation6 + $0x1], 1 }

</bundles_post_ra>
